<compile_context>
chip_gen: v5e
topology: v5e:2x2
jax: 0.10.0
libtpu: 0.0.40
codegen_flags: <defaults>
</compile_context>

<pallas_src>
import jax
import jax.numpy as jnp
from jax import lax
from jax.experimental import pallas as pl
from jax.experimental.pallas import tpu as pltpu

_MAX_TM = 1024                      # batch-tile rows per grid step
_VMEM_BUDGET = 48 * 1024 * 1024     # leave headroom under the 64 MiB scoped limit


def _kernel(x_ref, w_ref, b_ref, out_ref):
    """One batch tile of the linear layer: out = x @ W.T + b."""
    x = x_ref[...]                  # [TM, In]
    w = w_ref[...]                  # [Out, In]  (resident across the grid)
    # Contract the In axis of both operands on the MXU; f32 accumulation.
    acc = lax.dot_general(
        x, w,
        dimension_numbers=(((1,), (1,)), ((), ())),
        preferred_element_type=jnp.float32,
    )                               # [TM, Out] f32
    out_ref[...] = (acc + b_ref[...]).astype(out_ref.dtype)


def _pick_tm(B, In, Out, itemsize):
    """Largest batch tile (<= _MAX_TM) whose VMEM estimate fits the budget."""
    tm = min(B, _MAX_TM)
    resident = (Out * In + Out) * itemsize          # W + bias (single-buffered feel)

    def estimate(t):
        tiles = 2 * t * In * itemsize               # double-buffered x tiles
        tiles += 2 * t * Out * itemsize             # double-buffered out tiles
        tiles += t * Out * 4                        # f32 accumulator temporary
        return tiles + 2 * resident                 # conservative: invariants x2

    while tm > 8 and estimate(tm) > _VMEM_BUDGET:
        tm //= 2
    return tm


def ridge_regression_forward(x, weight, bias, alpha):
    """x: [B, In], weight: [Out, In], bias: [Out]. Returns (ridge_loss, out)."""
    B, In = x.shape
    Out = weight.shape[0]

    # Ridge penalty hoisted out of the kernel: tiny, input-invariant reduction.
    wf = weight if weight.dtype == jnp.float32 else weight.astype(jnp.float32)
    ridge_loss = jnp.float32(alpha) * jnp.sum(wf * wf)

    bias2d = bias.reshape(1, Out)

    tm = _pick_tm(B, In, Out, x.dtype.itemsize)
    grid = (pl.cdiv(B, tm),)

    out = pl.pallas_call(
        _kernel,
        out_shape=jax.ShapeDtypeStruct((B, Out), x.dtype),
        grid_spec=pltpu.PrefetchScalarGridSpec(
            num_scalar_prefetch=0,
            grid=grid,
            in_specs=[
                pl.BlockSpec((tm, In), lambda i: (i, 0)),    # x tile per batch step
                pl.BlockSpec((Out, In), lambda i: (0, 0)),   # W resident across grid
                pl.BlockSpec((1, Out), lambda i: (0, 0)),    # bias resident across grid
            ],
            out_specs=pl.BlockSpec((tm, Out), lambda i: (i, 0)),
        ),
        compiler_params=pltpu.CompilerParams(
            dimension_semantics=("parallel",),   # batch axis: shard across v7x TCs
            vmem_limit_bytes=64 * 1024 * 1024,
        ),
    )(x, weight, bias2d)

    return ridge_loss, out


if __name__ == "__main__":
    # Small shapes consistent with the module: batch=8, input_size=32, output_size=16.
    B, INPUT_SIZE, OUTPUT_SIZE = 8, 32, 16
    ALPHA = 0.1

    key = jax.random.PRNGKey(0)
    kx, kw, kb = jax.random.split(key, 3)

    x = jax.random.normal(kx, (B, INPUT_SIZE), dtype=jnp.float32)
    # Deterministic init mimicking nn.Linear's uniform(-1/sqrt(fan_in), 1/sqrt(fan_in)).
    bound = 1.0 / jnp.sqrt(jnp.float32(INPUT_SIZE))
    weight = jax.random.uniform(
        kw, (OUTPUT_SIZE, INPUT_SIZE), dtype=jnp.float32, minval=-bound, maxval=bound
    )
    bias = jax.random.uniform(
        kb, (OUTPUT_SIZE,), dtype=jnp.float32, minval=-bound, maxval=bound
    )

    ridge_loss, out = ridge_regression_forward(x, weight, bias, ALPHA)
    jax.block_until_ready((ridge_loss, out))

    # Pure-JAX reference check.
    ref_out = x @ weight.T + bias
    ref_loss = ALPHA * jnp.sum(jnp.square(weight))
    assert out.shape == (B, OUTPUT_SIZE)
    assert jnp.allclose(out, ref_out, atol=1e-5, rtol=1e-5)
    assert jnp.allclose(ridge_loss, ref_loss, atol=1e-6, rtol=1e-6)

    print("KERNEL_OK")
</pallas_src>

<mosaic_0001>
module attributes {stable_mosaic.version = 11 : i64} {
  func.func @_kernel(%arg0: i32, %arg1: memref<8x32xf32, #tpu.memory_space<vmem>>, %arg2: memref<16x32xf32, #tpu.memory_space<vmem>>, %arg3: memref<1x16xf32, #tpu.memory_space<vmem>>, %arg4: memref<8x16xf32, #tpu.memory_space<vmem>>) attributes {dimension_semantics = [#tpu.dimension_semantics<parallel>], iteration_bounds = array<i64: 1>, scalar_prefetch = 0 : i64, scratch_operands = 0 : i64, tpu.core_type = #tpu.core_type<tc>, window_params = [{transform_indices = @transform_0, window_bounds = array<i64: 8, 32>}, {pipeline_mode = #tpu.pipeline_mode<synchronous>, transform_indices = @transform_1, window_bounds = array<i64: 16, 32>}, {pipeline_mode = #tpu.pipeline_mode<synchronous>, transform_indices = @transform_2, window_bounds = array<i64: 1, 16>}, {transform_indices = @transform_3, window_bounds = array<i64: 8, 16>}]} {
    %c0 = arith.constant 0 : index
    %c0_0 = arith.constant 0 : index
    %0 = vector.load %arg1[%c0, %c0_0] : memref<8x32xf32, #tpu.memory_space<vmem>>, vector<8x32xf32>
    %c0_1 = arith.constant 0 : index
    %c0_2 = arith.constant 0 : index
    %1 = vector.load %arg2[%c0_1, %c0_2] : memref<16x32xf32, #tpu.memory_space<vmem>>, vector<16x32xf32>
    %cst = arith.constant dense<0.000000e+00> : vector<8x16xf32>
    %2 = tpu.matmul %0, %1, %cst {dimension_numbers = #tpu.dot_dimension_numbers<[1], [1], [0], [0], [0, 0, 1, 0], [], []>} : vector<8x32xf32>, vector<16x32xf32>, vector<8x16xf32> -> vector<8x16xf32>
    %c0_3 = arith.constant 0 : index
    %c0_4 = arith.constant 0 : index
    %3 = vector.load %arg3[%c0_3, %c0_4] : memref<1x16xf32, #tpu.memory_space<vmem>>, vector<1x16xf32>
    %4 = vector.broadcast %3 : vector<1x16xf32> to vector<8x16xf32>
    %5 = arith.addf %2, %4 : vector<8x16xf32>
    %c0_5 = arith.constant 0 : index
    %c0_6 = arith.constant 0 : index
    %6 = vector.load %arg4[%c0_5, %c0_6] : memref<8x16xf32, #tpu.memory_space<vmem>>, vector<8x16xf32>
    tpu.vector_store %arg4[%c0_5, %c0_6], %5 {strides = array<i32>} : memref<8x16xf32, #tpu.memory_space<vmem>>, vector<8x16xf32>,
    return
  }
  func.func @transform_0(%arg0: i32) -> (i32, i32) {
    %c0_i32 = arith.constant 0 : i32
    %c0_i32_0 = arith.constant 0 : i32
    return %arg0, %c0_i32 : i32, i32
  }
  func.func @transform_1(%arg0: i32) -> (i32, i32) {
    %c0_i32 = arith.constant 0 : i32
    %c0_i32_0 = arith.constant 0 : i32
    %c0_i32_1 = arith.constant 0 : i32
    return %c0_i32, %c0_i32_0 : i32, i32
  }
  func.func @transform_2(%arg0: i32) -> (i32, i32) {
    %c0_i32 = arith.constant 0 : i32
    %c0_i32_0 = arith.constant 0 : i32
    %c0_i32_1 = arith.constant 0 : i32
    return %c0_i32, %c0_i32_0 : i32, i32
  }
  func.func @transform_3(%arg0: i32) -> (i32, i32) {
    %c0_i32 = arith.constant 0 : i32
    %c0_i32_0 = arith.constant 0 : i32
    return %arg0, %c0_i32 : i32, i32
  }
}

</mosaic_0001>

<bundles_post_ra>
// kernel: tpu_custom_call.1
= control target key start
LH: loop header
LB: loop body
LE: loop exit
PB: predicated region body
PF: predicated region fallthrough
CT: control target
= control target key end

     0   :  { %8 = vsyncpa [#allocation3], 0  ;;  %s226_s0 = inlined_call_operand.hbm [shape: f32[8,32], index: 0, kind: input, shape index: {}]   ;;  %s227_s1 = inlined_call_operand.hbm [shape: f32[16,32], index: 1, kind: input, shape index: {}]   ;;  %s228_s2 = inlined_call_operand.vmem [shape: f32[1,16], index: 2, kind: input, shape index: {}]   ;;  %s229_s3 = inlined_call_operand.hbm [shape: f32[8,16], index: 3, kind: output, shape index: {}]  }
   0x1   :  { %9 = vsyncpa [#allocation6], 0 }
   0x2   :  { %10 = vsyncpa [#allocation4], 0  ;;  %s16_s14 = sshll.u32 %s226_s0, 4  ;;  %s189_s15 = smov [#allocation2]   ;;  %s17_s14 = int_to_ptr.hbm [resolvable:$true] %s16_s14 }
   0x3   :  { %s18_s16 = sshll.u32 %s189_s15, 4  ;;  %s26_s19 = sshll.u32 %s227_s1, 4  ;;  %s19_s16 = int_to_ptr.vmem [resolvable:$true] %s18_s16  ;;  %s27_s19 = int_to_ptr.hbm [resolvable:$true] %s26_s19 }
   0x4   :  { %21 = dma.hbm_to_vmem [thread:$0]  %s17_s14, 128, %s19_s16, [#allocation3]  }
   0x5   :  { %s190_s20 = smov [#allocation5]   ;;  %s191_s22 = smov 128  }
   0x6   :  { %s28_s21 = sshll.u32 %s190_s20, 4  ;;  %s192_s23 = smov 8   ;;  %s29_s21 = int_to_ptr.vmem [resolvable:$true] %s28_s21 }
   0x7   :  { %34 = dma.hbm_to_vmem [thread:$0]  %s27_s19, 256, %s29_s21, [#allocation6], %s191_s22, %s191_s22, %s192_s23  }
   0x8   :  { %183 = dma.done.wait [#allocation3], 128  }
   0x9   :  { %184 = vsyncadd [#allocation3], 4294967168 }
   0xa   :  { %185 = dma.done.wait [#allocation6], 256  }
   0xb   :  { %186 = vsyncadd [#allocation6], 4294967040  ;;  %vm52_vm0 = vcmask 261120   ;;  %v47_v0 = vld [vmem:[#allocation5 + $0x8] sm:$0xff]  ;;  %v46_v1 = vld [vmem:[#allocation5] sm:$0xff]  ;;  %s193_s24 = smov [#allocation7]  }
   0xc   :  { %102 = vmatpush.xpose.msk.msra.mxu0 %vm52_vm0, %v47_v0  ;;  %v45_v2 = vld [vmem:[#allocation2] sm:$0xff]  ;;  %s89_s25 = sshll.u32 %s193_s24, 4  ;;  %s91_s28 = sshll.u32 %s229_s3, 4  ;;  %vm82_vm1 = vcmask 130048   ;;  %s90_s25 = int_to_ptr.vmem [resolvable:$true] %s89_s25  ;;  %s92_s28 = int_to_ptr.hbm [resolvable:$true] %s91_s28 }
   0xd   :  { %v110_v3 = vld [vmem:[%s228_s2] ss:$0 sm:$0xff] }
  0x10   :  { %103 = vmatpush.xpose.msk.msra.mxu0 %vm52_vm0, %v46_v1 }
  0x13   :  { %104 = vmatmul.msk.f32.vlgmr.msra.gmra.mxu0 %vm52_vm0, %v45_v2 }
  0x90   :  { %v79_v4 = vpop.f32.mrf.mxu0 }
  0x91   :  { %v80_v5 = vadd.f32 %v110_v3, %v79_v4 }
  0x93   :  { %83 = vst.msk [vmem:[#allocation7] sm:$0xff] %vm82_vm1, %v80_v5 }
  0x94   :  { %94 = dma.vmem_to_hbm [thread:$0]  %s90_s25, 128, %s92_s28, [#allocation4]  }
  0x95   :  { %187 = dma.done.wait [#allocation4], 128  }
  0x96   :  { %188 = vsyncadd [#allocation4], 4294967168 }
  0x97   :  { %99 = vsyncpa [#allocation3], 1 }
  0x98   :  { %100 = vsyncpa [#allocation6], 1 }
  0x99   :  { %101 = vsyncpa [#allocation4], 1 }

</bundles_post_ra>
